<compile_context>
chip_gen: v5e
topology: v5e:2x2
jax: 0.10.0
libtpu: 0.0.40
codegen_flags: <defaults>
</compile_context>

<pallas_src>
import functools

import jax
import jax.numpy as jnp
from jax.experimental import pallas as pl
from jax.experimental.pallas import tpu as pltpu

_LANE = 128
_MIB = 1024 * 1024


def _vmem_capacity_bytes():
    """Best-effort per-core VMEM capacity (v5e/v6e: 128 MiB, v7x: 64 MiB)."""
    try:
        info = pltpu.get_tpu_info()
        cap = getattr(info, "vmem_capacity_bytes", None)
        if cap:
            return int(cap)
    except Exception:
        pass
    return 64 * _MIB  # conservative (v7x per-TC) fallback


def _sublane_multiple(dtypes):
    # Required row multiple for a (rows, 128) block per dtype packing:
    # 32-bit -> 8, 16-bit -> 16, 8-bit -> 32.
    return max(8 * (4 // jnp.dtype(d).itemsize) for d in dtypes)


def _pick_tile_rows(R, dtypes, vmem_cap, override=None):
    """Largest legal row tile whose pipeline VMEM fits the chip's budget."""
    mult = _sublane_multiple(dtypes)
    if override is not None:
        if override >= R:
            return R
        return max(mult, (int(override) // mult) * mult)
    # Budget: 4 inputs x 2 buffers x tile bytes + 4 f32 accumulators, kept
    # within ~half of VMEM (capped at 64 MiB so 128 MiB parts don't over-ask).
    budget = min(vmem_cap // 2, 64 * _MIB)
    in_bytes_per_row = 2 * _LANE * sum(jnp.dtype(d).itemsize for d in dtypes)
    acc_bytes_per_row = 4 * _LANE * 4
    budget_tile = budget // (in_bytes_per_row + acc_bytes_per_row)
    budget_tile = min(int(budget_tile), 8192)  # diminishing returns past ~8k rows
    if R <= budget_tile:
        return R  # full-extent block is always layout-legal
    return max(mult, (budget_tile // mult) * mult)


def _vmem_limit_bytes(tile_rows, dtypes, vmem_cap):
    in_bytes = 2 * tile_rows * _LANE * sum(jnp.dtype(d).itemsize for d in dtypes)
    acc_bytes = 4 * tile_rows * _LANE * 4
    need = in_bytes + acc_bytes + 2 * 4 * _LANE * 4  # + tiny output block
    limit = max(32 * _MIB, need + 8 * _MIB)          # headroom for internals
    return int(min(limit, (vmem_cap * 3) // 4))


def _cldice_sums_kernel(pred_ref, pskel_ref, y_ref, yskel_ref, out_ref,
                        acc0, acc1, acc2, acc3,
                        *, tile_rows, valid_rows_last, need_mask):
    """Accumulate lane-wide partial sums for one batch element.

    out block shape (1, 4, 128), written once at the last row tile:
      row 0: partials of sum(pred_skel * y)
      row 1: partials of sum(pred_skel)
      row 2: partials of sum(y_skel * pred)
      row 3: partials of sum(y_skel)
    """
    r = pl.program_id(1)
    last = pl.num_programs(1) - 1

    @pl.when(r == 0)
    def _():
        acc0[...] = jnp.zeros_like(acc0)
        acc1[...] = jnp.zeros_like(acc1)
        acc2[...] = jnp.zeros_like(acc2)
        acc3[...] = jnp.zeros_like(acc3)

    def accumulate(mask_tail):
        pred = pred_ref[0].astype(jnp.float32)     # (tile_rows, 128)
        pskel = pskel_ref[0].astype(jnp.float32)
        y = y_ref[0].astype(jnp.float32)
        yskel = yskel_ref[0].astype(jnp.float32)
        if mask_tail:
            # Rows past `valid_rows_last` in the final tile hold unspecified
            # data (array edge); zero them before the multiplies so garbage
            # (incl. NaNs) cannot reach the accumulators.
            row_ids = jax.lax.broadcasted_iota(jnp.int32, (tile_rows, _LANE), 0)
            valid = row_ids < valid_rows_last
            zero = jnp.zeros((), jnp.float32)
            pred = jnp.where(valid, pred, zero)
            pskel = jnp.where(valid, pskel, zero)
            y = jnp.where(valid, y, zero)
            yskel = jnp.where(valid, yskel, zero)
        # Pure per-vreg VALU adds into full-size f32 accumulators; the
        # sublane reduce is deferred to the final tile.
        acc0[...] += pskel * y
        acc1[...] += pskel
        acc2[...] += yskel * pred
        acc3[...] += yskel

    if need_mask:
        # Only the last row tile pays for the iota/compare/select work.
        @pl.when(r != last)
        def _():
            accumulate(False)

        @pl.when(r == last)
        def _():
            accumulate(True)
    else:
        accumulate(False)

    @pl.when(r == last)
    def _():
        s0 = jnp.sum(acc0[...], axis=0, keepdims=True)   # (1, 128)
        s1 = jnp.sum(acc1[...], axis=0, keepdims=True)
        s2 = jnp.sum(acc2[...], axis=0, keepdims=True)
        s3 = jnp.sum(acc3[...], axis=0, keepdims=True)
        out_ref[0] = jnp.concatenate([s0, s1, s2, s3], axis=0)  # (4, 128)


def _cldice_sums(pred2d, pskel2d, y2d, yskel2d, *, tile_rows_override=None):
    """Return (B, 4) f32: [sum(pskel*y), sum(pskel), sum(yskel*pred), sum(yskel)]."""
    B, N = pred2d.shape

    pad_cols = (-N) % _LANE
    if pad_cols:
        # TODO(synk): this <=127-column zero pad (sum-neutral) still copies all
        # four inputs once in HBM when C*H*W is not a multiple of 128; a fully
        # copy-free ragged path needs a 2-D element-masked block layout
        # (sublane-sparse for small B) or manual DMA, which is not worth it here.
        cfg = ((0, 0), (0, pad_cols))
        pred2d = jnp.pad(pred2d, cfg)
        pskel2d = jnp.pad(pskel2d, cfg)
        y2d = jnp.pad(y2d, cfg)
        yskel2d = jnp.pad(yskel2d, cfg)
    R = (N + pad_cols) // _LANE

    # Row-major (B, N_pad) -> (B, R, 128) is a zero-copy reshape.
    pred3 = pred2d.reshape(B, R, _LANE)
    pskel3 = pskel2d.reshape(B, R, _LANE)
    y3 = y2d.reshape(B, R, _LANE)
    yskel3 = yskel2d.reshape(B, R, _LANE)

    dtypes = (pred3.dtype, pskel3.dtype, y3.dtype, yskel3.dtype)
    vmem_cap = _vmem_capacity_bytes()
    tile_rows = _pick_tile_rows(R, dtypes, vmem_cap, override=tile_rows_override)
    r_tiles = pl.cdiv(R, tile_rows)
    need_mask = (R % tile_rows) != 0
    valid_rows_last = R - (r_tiles - 1) * tile_rows

    # TODO(synk): for B=1 (or odd B) on v7x, add a second "parallel" grid axis
    # that splits the row reduction across the 2 TensorCores.
    # TODO(synk): for very large B with tiny R, block the batch axis as well so
    # per-grid-step DMA stays >= a few MiB.

    in_spec = pl.BlockSpec((1, tile_rows, _LANE), lambda b, r: (b, r, 0))
    out_spec = pl.BlockSpec((1, 4, _LANE), lambda b, r: (b, 0, 0))

    kernel = functools.partial(
        _cldice_sums_kernel,
        tile_rows=tile_rows,
        valid_rows_last=valid_rows_last,
        need_mask=need_mask,
    )

    in_bytes_per_elem = sum(jnp.dtype(d).itemsize for d in dtypes)
    cost = pl.CostEstimate(
        flops=int(6 * B * R * _LANE),
        transcendentals=0,
        bytes_accessed=int(B * R * _LANE * in_bytes_per_elem + B * 4 * _LANE * 4),
    )

    acc_shape = pltpu.VMEM((tile_rows, _LANE), jnp.float32)

    partials = pl.pallas_call(
        kernel,
        out_shape=jax.ShapeDtypeStruct((B, 4, _LANE), jnp.float32),
        grid_spec=pltpu.PrefetchScalarGridSpec(
            num_scalar_prefetch=0,
            grid=(B, r_tiles),
            in_specs=[in_spec, in_spec, in_spec, in_spec],
            out_specs=out_spec,
            scratch_shapes=[acc_shape, acc_shape, acc_shape, acc_shape],
        ),
        compiler_params=pltpu.CompilerParams(
            dimension_semantics=("parallel", "arbitrary"),
            vmem_limit_bytes=_vmem_limit_bytes(tile_rows, dtypes, vmem_cap),
        ),
        cost_estimate=cost,
    )(pred3, pskel3, y3, yskel3)

    # Tiny cross-lane finish in plain JAX.
    return jnp.sum(partials, axis=-1)   # (B, 4) f32


@functools.partial(jax.jit, static_argnames=("tile_rows_override",))
def cldice_pallas(pred, pred_skel, y, y_skel, tile_rows_override=None):
    """clDice forward. Inputs: (B, C, *spatial), matching the PyTorch module.

    Inputs may be f32 / bf16 / int8 (binary masks): they are streamed in their
    own dtype and accumulated in f32 inside the kernel.
    """
    epsilon = 1e-05
    B = pred.shape[0]
    sums = _cldice_sums(
        pred.reshape(B, -1),
        pred_skel.reshape(B, -1),
        y.reshape(B, -1),
        y_skel.reshape(B, -1),
        tile_rows_override=tile_rows_override,
    )
    t_prec = (sums[:, 0] + epsilon) / (sums[:, 1] + epsilon)
    t_sens = (sums[:, 2] + epsilon) / (sums[:, 3] + epsilon)
    return jnp.mean(1.0 - 2.0 * t_prec * t_sens / (t_prec + t_sens))


def _reference(pred, pred_skel, y, y_skel):
    epsilon = 1e-05
    pred = pred.astype(jnp.float32)
    pred_skel = pred_skel.astype(jnp.float32)
    y = y.astype(jnp.float32)
    y_skel = y_skel.astype(jnp.float32)
    axes = tuple(range(1, pred.ndim))
    t_prec = (jnp.sum(pred_skel * y, axis=axes) + epsilon) / (
        jnp.sum(pred_skel, axis=axes) + epsilon)
    t_sens = (jnp.sum(y_skel * pred, axis=axes) + epsilon) / (
        jnp.sum(y_skel, axis=axes) + epsilon)
    return jnp.mean(1.0 - 2.0 * t_prec * t_sens / (t_prec + t_sens))


if __name__ == "__main__":
    key = jax.random.PRNGKey(0)

    # Test 1: canonical small shape, N multiple of 128 (no pad, single row tile).
    k1, k2, k3, k4, key = jax.random.split(key, 5)
    B, C, H, W = 2, 4, 16, 16
    pred = jax.random.uniform(k1, (B, C, H, W), dtype=jnp.float32)
    pred_skel = jax.random.uniform(k2, (B, C, H, W), dtype=jnp.float32)
    y = (jax.random.uniform(k3, (B, C, H, W)) > 0.5).astype(jnp.float32)
    y_skel = (jax.random.uniform(k4, (B, C, H, W)) > 0.8).astype(jnp.float32)

    out = jax.block_until_ready(cldice_pallas(pred, pred_skel, y, y_skel))
    ref = _reference(pred, pred_skel, y, y_skel)
    assert jnp.allclose(out, ref, rtol=1e-5, atol=1e-6), (out, ref)

    # Test 2: ragged shape + tiny row tile to exercise the column pad and the
    # last-tile-only in-kernel row mask path (R=10, tile_rows=8 -> 2 tiles).
    k1, k2, k3, k4, key = jax.random.split(key, 5)
    B2, C2, H2, W2 = 2, 3, 20, 20
    pred2 = jax.random.uniform(k1, (B2, C2, H2, W2), dtype=jnp.float32)
    pskel2 = jax.random.uniform(k2, (B2, C2, H2, W2), dtype=jnp.float32)
    y2 = (jax.random.uniform(k3, (B2, C2, H2, W2)) > 0.5).astype(jnp.float32)
    yskel2 = (jax.random.uniform(k4, (B2, C2, H2, W2)) > 0.8).astype(jnp.float32)

    out2 = jax.block_until_ready(
        cldice_pallas(pred2, pskel2, y2, yskel2, tile_rows_override=8))
    ref2 = _reference(pred2, pskel2, y2, yskel2)
    assert jnp.allclose(out2, ref2, rtol=1e-5, atol=1e-6), (out2, ref2)

    # Test 3: narrow streamed dtypes -- bf16 predictions + int8 binary masks
    # (bytes ~= time on this HBM-bound kernel). Kernel casts to f32 internally.
    k1, k2, k3, k4, key = jax.random.split(key, 5)
    B3, C3, H3, W3 = 2, 4, 32, 32
    pred3 = jax.random.uniform(k1, (B3, C3, H3, W3)).astype(jnp.bfloat16)
    pskel3 = jax.random.uniform(k2, (B3, C3, H3, W3)).astype(jnp.bfloat16)
    y3 = (jax.random.uniform(k3, (B3, C3, H3, W3)) > 0.5).astype(jnp.int8)
    yskel3 = (jax.random.uniform(k4, (B3, C3, H3, W3)) > 0.8).astype(jnp.int8)

    out3 = jax.block_until_ready(cldice_pallas(pred3, pskel3, y3, yskel3))
    ref3 = _reference(pred3, pskel3, y3, yskel3)
    assert jnp.allclose(out3, ref3, rtol=1e-3, atol=1e-5), (out3, ref3)

    print("KERNEL_OK")
</pallas_src>

<mosaic_0001>
module attributes {stable_mosaic.version = 11 : i64} {
  func.func @_cldice_sums_kernel(%arg0: i32, %arg1: i32, %arg2: memref<1x8x128xf32, #tpu.memory_space<vmem>>, %arg3: memref<1x8x128xf32, #tpu.memory_space<vmem>>, %arg4: memref<1x8x128xf32, #tpu.memory_space<vmem>>, %arg5: memref<1x8x128xf32, #tpu.memory_space<vmem>>, %arg6: memref<1x4x128xf32, #tpu.memory_space<vmem>>, %arg7: memref<8x128xf32, #tpu.memory_space<vmem>>, %arg8: memref<8x128xf32, #tpu.memory_space<vmem>>, %arg9: memref<8x128xf32, #tpu.memory_space<vmem>>, %arg10: memref<8x128xf32, #tpu.memory_space<vmem>>) attributes {dimension_semantics = [#tpu.dimension_semantics<parallel>, #tpu.dimension_semantics<arbitrary>], iteration_bounds = array<i64: 2, 1>, scalar_prefetch = 0 : i64, scratch_operands = 4 : i64, tpu.core_type = #tpu.core_type<tc>, window_params = [{transform_indices = @transform_0, window_bounds = array<i64: 1, 8, 128>}, {transform_indices = @transform_1, window_bounds = array<i64: 1, 8, 128>}, {transform_indices = @transform_2, window_bounds = array<i64: 1, 8, 128>}, {transform_indices = @transform_3, window_bounds = array<i64: 1, 8, 128>}, {transform_indices = @transform_4, window_bounds = array<i64: 1, 4, 128>}]} {
    %c0_i32 = arith.constant 0 : i32
    %0 = arith.cmpi eq, %arg1, %c0_i32 : i32
    %1 = arith.extui %0 : i1 to i32
    %c0_i32_0 = arith.constant 0 : i32
    %2 = arith.cmpi ne, %1, %c0_i32_0 : i32
    scf.if %2 {
      %cst = arith.constant 0.000000e+00 : f32
      %28 = vector.broadcast %cst : f32 to vector<8x128xf32>
      %c0_30 = arith.constant 0 : index
      %c0_31 = arith.constant 0 : index
      %29 = vector.load %arg7[%c0_30, %c0_31] : memref<8x128xf32, #tpu.memory_space<vmem>>, vector<8x128xf32>
      tpu.vector_store %arg7[%c0_30, %c0_31], %28 {strides = array<i32>} : memref<8x128xf32, #tpu.memory_space<vmem>>, vector<8x128xf32>,
      %cst_32 = arith.constant 0.000000e+00 : f32
      %30 = vector.broadcast %cst_32 : f32 to vector<8x128xf32>
      %c0_33 = arith.constant 0 : index
      %c0_34 = arith.constant 0 : index
      %31 = vector.load %arg8[%c0_33, %c0_34] : memref<8x128xf32, #tpu.memory_space<vmem>>, vector<8x128xf32>
      tpu.vector_store %arg8[%c0_33, %c0_34], %30 {strides = array<i32>} : memref<8x128xf32, #tpu.memory_space<vmem>>, vector<8x128xf32>,
      %cst_35 = arith.constant 0.000000e+00 : f32
      %32 = vector.broadcast %cst_35 : f32 to vector<8x128xf32>
      %c0_36 = arith.constant 0 : index
      %c0_37 = arith.constant 0 : index
      %33 = vector.load %arg9[%c0_36, %c0_37] : memref<8x128xf32, #tpu.memory_space<vmem>>, vector<8x128xf32>
      tpu.vector_store %arg9[%c0_36, %c0_37], %32 {strides = array<i32>} : memref<8x128xf32, #tpu.memory_space<vmem>>, vector<8x128xf32>,
      %cst_38 = arith.constant 0.000000e+00 : f32
      %34 = vector.broadcast %cst_38 : f32 to vector<8x128xf32>
      %c0_39 = arith.constant 0 : index
      %c0_40 = arith.constant 0 : index
      %35 = vector.load %arg10[%c0_39, %c0_40] : memref<8x128xf32, #tpu.memory_space<vmem>>, vector<8x128xf32>
      tpu.vector_store %arg10[%c0_39, %c0_40], %34 {strides = array<i32>} : memref<8x128xf32, #tpu.memory_space<vmem>>, vector<8x128xf32>,
    } else {
    }
    %c0 = arith.constant 0 : index
    %c0_1 = arith.constant 0 : index
    %c0_2 = arith.constant 0 : index
    %3 = vector.load %arg2[%c0, %c0_1, %c0_2] : memref<1x8x128xf32, #tpu.memory_space<vmem>>, vector<1x8x128xf32>
    %4 = vector.shape_cast %3 : vector<1x8x128xf32> to vector<8x128xf32>
    %c0_3 = arith.constant 0 : index
    %c0_4 = arith.constant 0 : index
    %c0_5 = arith.constant 0 : index
    %5 = vector.load %arg3[%c0_3, %c0_4, %c0_5] : memref<1x8x128xf32, #tpu.memory_space<vmem>>, vector<1x8x128xf32>
    %6 = vector.shape_cast %5 : vector<1x8x128xf32> to vector<8x128xf32>
    %c0_6 = arith.constant 0 : index
    %c0_7 = arith.constant 0 : index
    %c0_8 = arith.constant 0 : index
    %7 = vector.load %arg4[%c0_6, %c0_7, %c0_8] : memref<1x8x128xf32, #tpu.memory_space<vmem>>, vector<1x8x128xf32>
    %8 = vector.shape_cast %7 : vector<1x8x128xf32> to vector<8x128xf32>
    %c0_9 = arith.constant 0 : index
    %c0_10 = arith.constant 0 : index
    %c0_11 = arith.constant 0 : index
    %9 = vector.load %arg5[%c0_9, %c0_10, %c0_11] : memref<1x8x128xf32, #tpu.memory_space<vmem>>, vector<1x8x128xf32>
    %10 = vector.shape_cast %9 : vector<1x8x128xf32> to vector<8x128xf32>
    %c0_12 = arith.constant 0 : index
    %c0_13 = arith.constant 0 : index
    %11 = vector.load %arg7[%c0_12, %c0_13] : memref<8x128xf32, #tpu.memory_space<vmem>>, vector<8x128xf32>
    %12 = arith.mulf %6, %8 : vector<8x128xf32>
    %13 = arith.addf %11, %12 : vector<8x128xf32>
    %c0_14 = arith.constant 0 : index
    %c0_15 = arith.constant 0 : index
    %14 = vector.load %arg7[%c0_14, %c0_15] : memref<8x128xf32, #tpu.memory_space<vmem>>, vector<8x128xf32>
    tpu.vector_store %arg7[%c0_14, %c0_15], %13 {strides = array<i32>} : memref<8x128xf32, #tpu.memory_space<vmem>>, vector<8x128xf32>,
    %c0_16 = arith.constant 0 : index
    %c0_17 = arith.constant 0 : index
    %15 = vector.load %arg8[%c0_16, %c0_17] : memref<8x128xf32, #tpu.memory_space<vmem>>, vector<8x128xf32>
    %16 = arith.addf %15, %6 : vector<8x128xf32>
    %c0_18 = arith.constant 0 : index
    %c0_19 = arith.constant 0 : index
    %17 = vector.load %arg8[%c0_18, %c0_19] : memref<8x128xf32, #tpu.memory_space<vmem>>, vector<8x128xf32>
    tpu.vector_store %arg8[%c0_18, %c0_19], %16 {strides = array<i32>} : memref<8x128xf32, #tpu.memory_space<vmem>>, vector<8x128xf32>,
    %c0_20 = arith.constant 0 : index
    %c0_21 = arith.constant 0 : index
    %18 = vector.load %arg9[%c0_20, %c0_21] : memref<8x128xf32, #tpu.memory_space<vmem>>, vector<8x128xf32>
    %19 = arith.mulf %10, %4 : vector<8x128xf32>
    %20 = arith.addf %18, %19 : vector<8x128xf32>
    %c0_22 = arith.constant 0 : index
    %c0_23 = arith.constant 0 : index
    %21 = vector.load %arg9[%c0_22, %c0_23] : memref<8x128xf32, #tpu.memory_space<vmem>>, vector<8x128xf32>
    tpu.vector_store %arg9[%c0_22, %c0_23], %20 {strides = array<i32>} : memref<8x128xf32, #tpu.memory_space<vmem>>, vector<8x128xf32>,
    %c0_24 = arith.constant 0 : index
    %c0_25 = arith.constant 0 : index
    %22 = vector.load %arg10[%c0_24, %c0_25] : memref<8x128xf32, #tpu.memory_space<vmem>>, vector<8x128xf32>
    %23 = arith.addf %22, %10 : vector<8x128xf32>
    %c0_26 = arith.constant 0 : index
    %c0_27 = arith.constant 0 : index
    %24 = vector.load %arg10[%c0_26, %c0_27] : memref<8x128xf32, #tpu.memory_space<vmem>>, vector<8x128xf32>
    tpu.vector_store %arg10[%c0_26, %c0_27], %23 {strides = array<i32>} : memref<8x128xf32, #tpu.memory_space<vmem>>, vector<8x128xf32>,
    %c0_i32_28 = arith.constant 0 : i32
    %25 = arith.cmpi eq, %arg1, %c0_i32_28 : i32
    %26 = arith.extui %25 : i1 to i32
    %c0_i32_29 = arith.constant 0 : i32
    %27 = arith.cmpi ne, %26, %c0_i32_29 : i32
    scf.if %27 {
      %c0_30 = arith.constant 0 : index
      %c0_31 = arith.constant 0 : index
      %28 = vector.load %arg7[%c0_30, %c0_31] : memref<8x128xf32, #tpu.memory_space<vmem>>, vector<8x128xf32>
      %cst = arith.constant dense<0.000000e+00> : vector<128xf32>
      %29 = vector.multi_reduction <add>, %28, %cst [0] : vector<8x128xf32> to vector<128xf32>
      %30 = vector.shape_cast %29 : vector<128xf32> to vector<1x128xf32>
      %c0_32 = arith.constant 0 : index
      %c0_33 = arith.constant 0 : index
      %31 = vector.load %arg8[%c0_32, %c0_33] : memref<8x128xf32, #tpu.memory_space<vmem>>, vector<8x128xf32>
      %cst_34 = arith.constant dense<0.000000e+00> : vector<128xf32>
      %32 = vector.multi_reduction <add>, %31, %cst_34 [0] : vector<8x128xf32> to vector<128xf32>
      %33 = vector.shape_cast %32 : vector<128xf32> to vector<1x128xf32>
      %c0_35 = arith.constant 0 : index
      %c0_36 = arith.constant 0 : index
      %34 = vector.load %arg9[%c0_35, %c0_36] : memref<8x128xf32, #tpu.memory_space<vmem>>, vector<8x128xf32>
      %cst_37 = arith.constant dense<0.000000e+00> : vector<128xf32>
      %35 = vector.multi_reduction <add>, %34, %cst_37 [0] : vector<8x128xf32> to vector<128xf32>
      %36 = vector.shape_cast %35 : vector<128xf32> to vector<1x128xf32>
      %c0_38 = arith.constant 0 : index
      %c0_39 = arith.constant 0 : index
      %37 = vector.load %arg10[%c0_38, %c0_39] : memref<8x128xf32, #tpu.memory_space<vmem>>, vector<8x128xf32>
      %cst_40 = arith.constant dense<0.000000e+00> : vector<128xf32>
      %38 = vector.multi_reduction <add>, %37, %cst_40 [0] : vector<8x128xf32> to vector<128xf32>
      %39 = vector.shape_cast %38 : vector<128xf32> to vector<1x128xf32>
      %40 = tpu.concatenate %30, %33, %36, %39 in 0 : vector<1x128xf32>, vector<1x128xf32>, vector<1x128xf32>, vector<1x128xf32> -> vector<4x128xf32>
      %c0_41 = arith.constant 0 : index
      %c0_42 = arith.constant 0 : index
      %c0_43 = arith.constant 0 : index
      %41 = vector.load %arg6[%c0_41, %c0_42, %c0_43] : memref<1x4x128xf32, #tpu.memory_space<vmem>>, vector<1x4x128xf32>
      %42 = vector.shape_cast %41 : vector<1x4x128xf32> to vector<4x128xf32>
      %43 = vector.shape_cast %40 : vector<4x128xf32> to vector<1x4x128xf32>
      tpu.vector_store %arg6[%c0_41, %c0_42, %c0_43], %43 {strides = array<i32>} : memref<1x4x128xf32, #tpu.memory_space<vmem>>, vector<1x4x128xf32>,
    } else {
    }
    return
  }
  func.func @transform_0(%arg0: i32, %arg1: i32) -> (i32, i32, i32) {
    %c0_i32 = arith.constant 0 : i32
    %c0_i32_0 = arith.constant 0 : i32
    return %arg0, %arg1, %c0_i32 : i32, i32, i32
  }
  func.func @transform_1(%arg0: i32, %arg1: i32) -> (i32, i32, i32) {
    %c0_i32 = arith.constant 0 : i32
    %c0_i32_0 = arith.constant 0 : i32
    return %arg0, %arg1, %c0_i32 : i32, i32, i32
  }
  func.func @transform_2(%arg0: i32, %arg1: i32) -> (i32, i32, i32) {
    %c0_i32 = arith.constant 0 : i32
    %c0_i32_0 = arith.constant 0 : i32
    return %arg0, %arg1, %c0_i32 : i32, i32, i32
  }
  func.func @transform_3(%arg0: i32, %arg1: i32) -> (i32, i32, i32) {
    %c0_i32 = arith.constant 0 : i32
    %c0_i32_0 = arith.constant 0 : i32
    return %arg0, %arg1, %c0_i32 : i32, i32, i32
  }
  func.func @transform_4(%arg0: i32, %arg1: i32) -> (i32, i32, i32) {
    %c0_i32 = arith.constant 0 : i32
    %c0_i32_0 = arith.constant 0 : i32
    %c0_i32_1 = arith.constant 0 : i32
    return %arg0, %c0_i32, %c0_i32_0 : i32, i32, i32
  }
}

</mosaic_0001>

<bundles_post_ra>
// kernel: cldice_pallas.1
= control target key start
LH: loop header
LB: loop body
LE: loop exit
PB: predicated region body
PF: predicated region fallthrough
CT: control target
= control target key end

     0   :  { %s558_s15 = smov 0   ;;  %s560_s16 = smov 0   ;;  %s604_s0 = inlined_call_operand.vmem [shape: f32[2,8,128], index: 0, kind: input, shape index: {}]   ;;  %s605_s1 = inlined_call_operand.vmem [shape: f32[2,8,128], index: 1, kind: input, shape index: {}]   ;;  %s606_s2 = inlined_call_operand.vmem [shape: f32[2,8,128], index: 2, kind: input, shape index: {}]   ;;  %s607_s3 = inlined_call_operand.vmem [shape: f32[2,8,128], index: 3, kind: input, shape index: {}]   ;;  %s608_s4 = inlined_call_operand.vmem [shape: f32[2,4,128], index: 4, kind: output, shape index: {}]  }
   0x1   :  { %s562_s17 = smov 0  }
   0x2 LB: > { %s26_s18 = sadd.s32 1, %s527_s16  ;;  %p477_p0 = scmp.ge.s32.totalorder %s531_s17, 1  ;;  %s531_s17 = sphi %s562_s17, %s14_s17   ;;  %s527_s16 = sphi %s560_s16, %s610_s16   ;;  %s523_s15 = sphi %s558_s15, %s609_s15  }
   0x3   : > { %p28_p1 = scmp.ge.s32.totalorder %s26_s18, 2  ;;  %p220_p2 = scmp.lt.s32.totalorder %s531_s17, 3 }
   0x5   : > { %s612_s18 = smov (%p28_p1, %s26_s18), 0  ;;  %p221_p3 = pnand %p477_p0, %p220_p2 }
   0x6   : > { %p268_p4 = scmp.lt.s32.totalorder (!%p221_p3), %s523_s15, 1 }
   0x7   : > { %224 = sbr.rel (%p221_p3) target bundleno = 36 (0x24), region = 36 }
   0xc   : > { %s614_s15 = smov (!%p268_p4, %s523_s15), 1  ;;  %vm357_vm0 = vcmask 1040384   ;;  %vm359_vm1 = vcmask 1041408   ;;  %vm361_vm2 = vcmask 1042432  }
   0xd   : > { %s478_s19 = sshll.u32 %s614_s15, 3  ;;  %s482_s6 = sshll.u32 %s614_s15, 2 }
   0xe   : > { %s274_s22 = scalar_lea.vmem %s604_s0, %s478_s19  ;;  %s281_s25 = scalar_lea.vmem %s605_s1, %s478_s19 }
   0xf   : > { %s288_s28 = scalar_lea.vmem %s606_s2, %s478_s19  ;;  %s295_s5 = scalar_lea.vmem %s607_s3, %s478_s19  ;;  %v308_v0 = vld [vmem:[%s274_s22] sm:$0xff] }
  0x10   : > { %v309_v1 = vld [vmem:[%s281_s25] sm:$0xff]  ;;  %s299_s9 = scalar_lea.vmem %s608_s4, %s482_s6 }
  0x11   : > { %v310_v2 = vld [vmem:[%s288_s28] sm:$0xff]  ;;  %v337_v4 = vrot.slane %v309_v1, 4 }
  0x12   : > { %v311_v3 = vld [vmem:[%s295_s5] sm:$0xff]  ;;  %v313_v5 = vmul.f32 %v310_v2, %v309_v1 }
  0x13   : > { %v320_v6 = vmul.f32 %v311_v3, %v308_v0  ;;  %v351_v7 = vrot.slane %v311_v3, 4  ;;  %v338_v8 = vadd.f32 %v337_v4, %v309_v1 }
  0x14   : > { %v330_v9 = vrot.slane %v313_v5, 4 }
  0x15   : > { %v344_v10 = vrot.slane %v320_v6, 4  ;;  %v352_v11 = vadd.f32 %v351_v7, %v311_v3  ;;  %v339_v12 = vrot.slane %v338_v8, 2 }
  0x16   : > { %v331_v13 = vadd.f32 %v330_v9, %v313_v5 }
  0x17   : > { %v345_v14 = vadd.f32 %v344_v10, %v320_v6  ;;  %v353_v15 = vrot.slane %v352_v11, 2  ;;  %v340_v16 = vadd.f32 %v339_v12, %v338_v8 }
  0x18   : > { %v332_v17 = vrot.slane %v331_v13, 2 }
  0x19   : > { %v346_v18 = vrot.slane %v345_v14, 2  ;;  %v354_v19 = vadd.f32 %v353_v15, %v352_v11  ;;  %v341_v20 = vrot.slane %v340_v16, 1 }
  0x1a   : > { %v333_v21 = vadd.f32 %v332_v17, %v331_v13 }
  0x1b   : > { %v347_v22 = vadd.f32 %v346_v18, %v345_v14  ;;  %v355_v23 = vrot.slane %v354_v19, 1  ;;  %v342_v25 = vadd.f32 %v341_v20, %v340_v16 }
  0x1c   : > { %v334_v24 = vrot.slane %v333_v21, 1 }
  0x1d   : > { %v348_v26 = vrot.slane %v347_v22, 1  ;;  %v356_v29 = vadd.f32 %v355_v23, %v354_v19 }
  0x1e   : > { %v335_v27 = vadd.f32 %v334_v24, %v333_v21 }
  0x1f   : > { %v349_v28 = vadd.f32 %v348_v26, %v347_v22 }
  0x20   : > { %v358_v30 = vsel %vm357_vm0, %v335_v27, %v342_v25 }
  0x21   : > { %v360_v31 = vsel %vm359_vm1, %v358_v30, %v349_v28 }
  0x22   : > { %v362_v32 = vsel %vm361_vm2, %v360_v31, %v356_v29 }
  0x23   : > { %363 = vst [vmem:[%s299_s9] sm:$0xf] %v362_v32 }
  0x24 PF: > { %s14_s17 = sadd.s32 1, %s531_s17   ;;  %s609_s15 = smov %s527_s16 }
  0x25   : > { %p11_p5 = scmp.ge.s32.totalorder %s14_s17, 4   ;;  %s610_s16 = smov %s612_s18 }
  0x27   :  { %13 = sbr.rel (!%p11_p5) target bundleno = 2 (0x2), region = 83 }

</bundles_post_ra>
